<compile_context>
chip_gen: v6e
topology: v6e:2x2x1
jax: 0.10.0
libtpu: 0.0.40
codegen_flags: <defaults>
</compile_context>

<pallas_src>
import jax
import jax.numpy as jnp
from jax.experimental import pallas as pl
from jax.experimental.pallas import tpu as pltpu

_LANE = 128


def _ceil_div(a, b):
    return -(-a // b)


def _round_up(a, b):
    return _ceil_div(a, b) * b


# ---------------------------------------------------------------------------
# Kernels
# ---------------------------------------------------------------------------
def _pool_single_kernel(x_ref, m_ref, o_ref):
    """Whole T fits in one block: direct reduce, no cross-step accumulator."""
    x = x_ref[...].astype(jnp.float32)          # (b_tile, C, T)
    m = m_ref[...].astype(jnp.float32)          # (b_tile, 1, T)
    s = jnp.sum(x * m, axis=-1)                 # (b_tile, C)
    n = jnp.sum(m, axis=-1)                     # (b_tile, 1)
    # 0/0 -> NaN on an all-zero mask row, matching the PyTorch reference.
    o_ref[...] = (s / n)[:, None, :].astype(o_ref.dtype)


def _make_pool_tiled_kernel(T, t_tile):
    """T is tiled: lane-resident f32 partial sums, finalize on the last step."""
    n_chunks = t_tile // _LANE
    ragged = (T % t_tile) != 0

    def kernel(x_ref, m_ref, o_ref, acc_ref, n_ref):
        t = pl.program_id(1)

        @pl.when(t == 0)
        def _init():
            acc_ref[...] = jnp.zeros_like(acc_ref)
            n_ref[...] = jnp.zeros_like(n_ref)

        t_start = t * t_tile
        if ragged:  # hoisted out of the chunk loop
            lane = jax.lax.broadcasted_iota(jnp.int32, (1, 1, _LANE), 2)

        # Pure-VPU lane-wise accumulation; no cross-lane work in the hot loop.
        for q in range(n_chunks):
            lo = q * _LANE
            xq = x_ref[:, :, lo:lo + _LANE].astype(jnp.float32)  # (b, C, 128)
            mq = m_ref[:, :, lo:lo + _LANE].astype(jnp.float32)  # (b, 1, 128)
            if ragged:
                # Tail block: VMEM contents past T are undefined garbage, so
                # select them away (a multiply-by-zero could inject NaN).
                valid = (lane + (t_start + lo)) < T
                xm = jnp.where(valid, xq * mq, 0.0)
                mv = jnp.where(valid, mq, 0.0)
            else:
                xm = xq * mq
                mv = mq
            acc_ref[...] += xm                   # (b_tile, C, 128)
            n_ref[...] += mv                     # (b_tile, 1, 128)

        @pl.when(t == pl.num_programs(1) - 1)
        def _finalize():
            s = jnp.sum(acc_ref[...], axis=-1)   # (b_tile, C): single XLU reduce
            n = jnp.sum(n_ref[...], axis=-1)     # (b_tile, 1)
            o_ref[...] = (s / n)[:, None, :].astype(o_ref.dtype)

    return kernel


# ---------------------------------------------------------------------------
# Wrapper
# ---------------------------------------------------------------------------
def masked_avg_pool_1d(x, mask, *, pipeline_budget_bytes=None):
    """x: (B, C, T); mask: (B, 1, T) or (B, T) with 1/0. Returns (B, C, 1)."""
    B, C, T = x.shape
    if mask.ndim == 2:
        mask = mask[:, None, :]
    assert mask.shape == (B, 1, T), f"mask shape {mask.shape} != {(B, 1, T)}"

    # Keep narrow floating masks as-is (upcast in-kernel); cast bool/int once.
    if not jnp.issubdtype(mask.dtype, jnp.floating):
        mask = mask.astype(x.dtype)

    x_item = jnp.dtype(x.dtype).itemsize
    m_item = jnp.dtype(mask.dtype).itemsize

    # ---- generation-aware budgets ------------------------------------------
    try:
        vmem_cap = int(getattr(pltpu.get_tpu_info(), "vmem_capacity_bytes",
                               64 << 20))
    except Exception:                 # unknown target: be conservative
        vmem_cap = 64 << 20
    if vmem_cap >= (96 << 20):        # v5e / v6e: 128 MiB VMEM per core
        default_budget = 24 << 20     # double-buffered x + mask input windows
        base_limit = 64 << 20
        force_two_batch_blocks = False
    else:                             # v7x (64 MiB VMEM) or unknown
        default_budget = 10 << 20
        base_limit = 40 << 20
        force_two_batch_blocks = True  # let Mosaic shard batch over 2 TCs
    budget = int(pipeline_budget_bytes or default_budget)

    # ---- tile selection ------------------------------------------------------
    # VMEM bytes per (batch row, time step), both pipeline buffers, including
    # sublane padding: x's second-minor C pads to a native tile row, and the
    # (b, 1, t) mask block's size-1 sublane pads to a full 32-byte tile row.
    x_row_bytes = _round_up(C, max(1, 32 // x_item)) * x_item
    row_bytes_per_t = 2 * (x_row_bytes + 32)
    cells = max(_LANE, budget // row_bytes_per_t)   # (row, t) cells in budget

    T_PREF_CAP = 8192    # preferred t_tile when batch packing can fill budget
    T_HARD_CAP = 16384   # absolute bound (bounds in-kernel chunk unrolling)

    if T <= cells:
        # Whole T in one step; a full-extent last dim needs no 128 alignment.
        t_tile, num_t = T, 1
    else:
        t_cap = min(cells, T_HARD_CAP, max(T_PREF_CAP, cells // max(B, 1)))
        t_tile = max(_LANE, (t_cap // _LANE) * _LANE)
        num_t = _ceil_div(T, t_tile)

    # Batch rows per block: fill the remaining budget, keep the lane-resident
    # accumulator small, and on dual-TC chips leave >=2 parallel batch blocks.
    rows_fit = max(1, cells // _round_up(t_tile, _LANE))
    acc_rows_cap = max(1, (2 << 20) // (_round_up(C, 8) * _LANE * 4))
    cap = min(B, rows_fit, acc_rows_cap)
    if force_two_batch_blocks and B > 1:
        cap = min(cap, _ceil_div(B, 2))
    b_tile = 1
    for d in range(max(cap, 1), 0, -1):  # largest divisor of B: no ragged batch
        if B % d == 0:
            b_tile = d
            break
    num_b = B // b_tile

    # ---- VMEM limit (layout-padded footprint + headroom) --------------------
    t_vmem = _round_up(t_tile, _LANE)
    est_bytes = (2 * b_tile * x_row_bytes * t_vmem           # x blocks (x2)
                 + 2 * b_tile * 32 * t_vmem                   # mask blocks (x2)
                 + 2 * b_tile * 32 * _round_up(C, _LANE)      # output block
                 + b_tile * _round_up(C, 8) * _LANE * 4       # acc scratch
                 + b_tile * 8 * _LANE * 4)                    # n scratch
    vmem_limit = int(min(vmem_cap, max(base_limit, est_bytes + (8 << 20))))

    cost = pl.CostEstimate(
        flops=2 * B * C * T,
        transcendentals=0,
        bytes_accessed=B * C * T * x_item + B * T * m_item + B * C * x_item,
    )
    out_shape = jax.ShapeDtypeStruct((B, 1, C), x.dtype)  # lane-dense: C on lanes

    if num_t == 1:
        grid_spec = pltpu.PrefetchScalarGridSpec(
            num_scalar_prefetch=0,
            grid=(num_b,),
            in_specs=[
                pl.BlockSpec((b_tile, C, T), lambda b: (b, 0, 0)),
                pl.BlockSpec((b_tile, 1, T), lambda b: (b, 0, 0)),
            ],
            out_specs=pl.BlockSpec((b_tile, 1, C), lambda b: (b, 0, 0)),
        )
        kernel = _pool_single_kernel
        dims = ("parallel",)
    else:
        grid_spec = pltpu.PrefetchScalarGridSpec(
            num_scalar_prefetch=0,
            grid=(num_b, num_t),                    # reduction (T) axis last
            in_specs=[
                pl.BlockSpec((b_tile, C, t_tile), lambda b, t: (b, 0, t)),
                pl.BlockSpec((b_tile, 1, t_tile), lambda b, t: (b, 0, t)),
            ],
            # Same output block across the T axis -> resident accumulator tile.
            out_specs=pl.BlockSpec((b_tile, 1, C), lambda b, t: (b, 0, 0)),
            scratch_shapes=[
                pltpu.VMEM((b_tile, C, _LANE), jnp.float32),
                pltpu.VMEM((b_tile, 1, _LANE), jnp.float32),
            ],
        )
        kernel = _make_pool_tiled_kernel(T, t_tile)
        dims = ("parallel", "arbitrary")

    out = pl.pallas_call(
        kernel,
        out_shape=out_shape,
        grid_spec=grid_spec,
        compiler_params=pltpu.CompilerParams(
            dimension_semantics=dims,
            vmem_limit_bytes=vmem_limit,
        ),
        cost_estimate=cost,
    )(x, mask)

    # (B, 1, C) lane-dense output -> (B, C, 1) module output.  Row-major order
    # is identical, so the reshape is exact (no transpose needed).
    return out.reshape(B, C, 1)


# ---------------------------------------------------------------------------
# Reference + tests
# ---------------------------------------------------------------------------
def _reference(x, mask):
    xf = x.astype(jnp.float32)
    mf = mask.astype(jnp.float32)
    return jnp.sum(xf * mf, axis=-1, keepdims=True) / jnp.sum(
        mf, axis=-1, keepdims=True)


def _length_mask(key, B, T, dtype):
    lengths = jax.random.randint(key, (B,), minval=1, maxval=T + 1)
    pos = jnp.arange(T)[None, None, :]
    return (pos < lengths[:, None, None]).astype(dtype)


if __name__ == "__main__":
    key = jax.random.PRNGKey(0)
    k1, k2, k3, k4, k5, k6 = jax.random.split(key, 6)

    # --- test 1: nominal small shapes, single-block (num_t == 1) path -------
    B, C, T = 2, 4, 16
    x1 = jax.random.normal(k1, (B, C, T), dtype=jnp.float32)
    m1 = _length_mask(k2, B, T, jnp.float32)
    out1 = jax.block_until_ready(masked_avg_pool_1d(x1, m1))
    ref1 = _reference(x1, m1)
    assert out1.shape == (B, C, 1)
    assert jnp.allclose(out1, ref1, atol=1e-5, rtol=1e-5), "test 1 mismatch"

    # --- test 2: tiled-T path, ragged tail, b_tile < B, narrow (bf16) mask --
    B2, C2, T2 = 3, 8, 300
    x2 = jax.random.normal(k3, (B2, C2, T2), dtype=jnp.float32)
    m2 = _length_mask(k4, B2, T2, jnp.bfloat16)
    out2 = jax.block_until_ready(
        masked_avg_pool_1d(x2, m2, pipeline_budget_bytes=16 * 1024))
    ref2 = _reference(x2, m2)
    assert out2.shape == (B2, C2, 1)
    assert jnp.allclose(out2, ref2, atol=1e-5, rtol=1e-5), "test 2 mismatch"

    # --- test 3: bf16 activations, boolean mask, single-block path ----------
    B3, C3, T3 = 2, 4, 50
    x3 = jax.random.normal(k5, (B3, C3, T3), dtype=jnp.bfloat16)
    m3 = _length_mask(k6, B3, T3, jnp.bool_)
    out3 = jax.block_until_ready(masked_avg_pool_1d(x3, m3))
    ref3 = _reference(x3, m3)
    assert out3.shape == (B3, C3, 1)
    assert jnp.allclose(out3.astype(jnp.float32), ref3, atol=2e-2, rtol=2e-2), \
        "test 3 mismatch"

    print("KERNEL_OK")
</pallas_src>

<mosaic_0001>
module attributes {stable_mosaic.version = 11 : i64} {
  func.func @_pool_single_kernel(%arg0: i32, %arg1: memref<1x4x16xf32, #tpu.memory_space<vmem>>, %arg2: memref<1x1x16xf32, #tpu.memory_space<vmem>>, %arg3: memref<1x1x4xf32, #tpu.memory_space<vmem>>) attributes {dimension_semantics = [#tpu.dimension_semantics<parallel>], iteration_bounds = array<i64: 2>, scalar_prefetch = 0 : i64, scratch_operands = 0 : i64, tpu.core_type = #tpu.core_type<tc>, window_params = [{transform_indices = @transform_0, window_bounds = array<i64: 1, 4, 16>}, {transform_indices = @transform_1, window_bounds = array<i64: 1, 1, 16>}, {transform_indices = @transform_2, window_bounds = array<i64: 1, 1, 4>}]} {
    %c0 = arith.constant 0 : index
    %c0_0 = arith.constant 0 : index
    %c0_1 = arith.constant 0 : index
    %0 = vector.load %arg1[%c0, %c0_0, %c0_1] : memref<1x4x16xf32, #tpu.memory_space<vmem>>, vector<1x4x16xf32>
    %c0_2 = arith.constant 0 : index
    %c0_3 = arith.constant 0 : index
    %c0_4 = arith.constant 0 : index
    %1 = vector.load %arg2[%c0_2, %c0_3, %c0_4] : memref<1x1x16xf32, #tpu.memory_space<vmem>>, vector<1x1x16xf32>
    %2 = vector.broadcast %1 : vector<1x1x16xf32> to vector<1x4x16xf32>
    %3 = arith.mulf %0, %2 : vector<1x4x16xf32>
    %cst = arith.constant dense<0.000000e+00> : vector<1x4xf32>
    %4 = vector.multi_reduction <add>, %3, %cst [2] : vector<1x4x16xf32> to vector<1x4xf32>
    %cst_5 = arith.constant dense<0.000000e+00> : vector<1x1xf32>
    %5 = vector.multi_reduction <add>, %1, %cst_5 [2] : vector<1x1x16xf32> to vector<1x1xf32>
    %6 = vector.broadcast %5 : vector<1x1xf32> to vector<1x4xf32>
    %7 = arith.divf %4, %6 : vector<1x4xf32>
    %8 = vector.shape_cast %7 : vector<1x4xf32> to vector<1x1x4xf32>
    %c0_6 = arith.constant 0 : index
    %c0_7 = arith.constant 0 : index
    %c0_8 = arith.constant 0 : index
    %9 = vector.load %arg3[%c0_6, %c0_7, %c0_8] : memref<1x1x4xf32, #tpu.memory_space<vmem>>, vector<1x1x4xf32>
    tpu.vector_store %arg3[%c0_6, %c0_7, %c0_8], %8 {strides = array<i32>} : memref<1x1x4xf32, #tpu.memory_space<vmem>>, vector<1x1x4xf32>,
    return
  }
  func.func @transform_0(%arg0: i32) -> (i32, i32, i32) {
    %c0_i32 = arith.constant 0 : i32
    %c0_i32_0 = arith.constant 0 : i32
    %c0_i32_1 = arith.constant 0 : i32
    return %arg0, %c0_i32, %c0_i32_0 : i32, i32, i32
  }
  func.func @transform_1(%arg0: i32) -> (i32, i32, i32) {
    %c0_i32 = arith.constant 0 : i32
    %c0_i32_0 = arith.constant 0 : i32
    %c0_i32_1 = arith.constant 0 : i32
    return %arg0, %c0_i32, %c0_i32_0 : i32, i32, i32
  }
  func.func @transform_2(%arg0: i32) -> (i32, i32, i32) {
    %c0_i32 = arith.constant 0 : i32
    %c0_i32_0 = arith.constant 0 : i32
    %c0_i32_1 = arith.constant 0 : i32
    return %arg0, %c0_i32, %c0_i32_0 : i32, i32, i32
  }
}

</mosaic_0001>

<bundles_post_ra>
// kernel: tpu_custom_call.1
= control target key start
LH: loop header
LB: loop body
LE: loop exit
PB: predicated region body
PF: predicated region fallthrough
CT: control target
= control target key end

     0   :  { %7 = vsyncpa [#allocation3], 0  ;;  %s731_s0 = inlined_call_operand.hbm [shape: f32[2,4,16], index: 0, kind: input, shape index: {}]   ;;  %s732_s1 = inlined_call_operand.hbm [shape: f32[2,1,16], index: 1, kind: input, shape index: {}]   ;;  %s733_s2 = inlined_call_operand.hbm [shape: f32[2,1,4], index: 2, kind: output, shape index: {}]  }
   0x1   :  { %9 = vsyncpa [#allocation3 + $0x1], 0 }
   0x2   :  { %10 = vsyncpa [#allocation6], 0 }
   0x3   :  { %12 = vsyncpa [#allocation6 + $0x1], 0 }
   0x4   :  { %13 = vsyncpa [#allocation4], 0 }
   0x5   :  { %15 = vsyncpa [#allocation4 + $0x1], 0  ;;  %s541_s9 = smov 0   ;;  %s543_s10 = smov 0  }
   0x6   :  { %s545_s11 = smov 0   ;;  %s547_s12 = smov 0  }
   0x7 LB: > { %s562_s13 = sadd.s32 4294967295, %s520_s12   ;;  %s329_s14 = sadd.s32 4294967294, %s520_s12   ;;  %s520_s12 = sphi %s547_s12, %s752_s12   ;;  %s516_s11 = sphi %s545_s11, %s751_s11   ;;  %s512_s10 = sphi %s543_s10, %s750_s10   ;;  %s508_s9 = sphi %s541_s9, %s749_s9  }
   0x8   : > { %s566_s15 = sadd.s32 1, %s520_s12   ;;  %s28_s16 = sadd.s32 1, %s516_s11 }
   0x9   : > { %s25_s17 = ssub.s32 %s520_s12, %s566_s15  ;;  %p35_p0 = scmp.ne.s32.totalorder %s516_s11, %s512_s10 }
   0xa   : > { %p26_p1 = scmp.eq.s32.totalorder %s25_s17, 0  ;;  %p36_p2 = scmp.eq.s32.totalorder %s520_s12, 0 }
   0xb   : > { %p41_p3 = scmp.ne.s32.totalorder %s512_s10, %s508_s9  ;;  %p42_p4 = scmp.eq.s32.totalorder %s562_s13, 0 }
   0xc   : > { %s578_s18 = scalar_select %p26_p1, %s516_s11, %s28_s16  }
   0xd   : > { %p580_p5 = por %p36_p2, %p35_p0  ;;  %p584_p6 = por %p42_p4, %p41_p3 }
   0xe   : > { %p91_p7 = scmp.eq.s32.totalorder %s562_s13, 1  ;;  %p97_p8 = scmp.eq.s32.totalorder %s329_s14, 1 }
   0xf   : > { %s737_s20 = scalar_select %p584_p6, 1, 0 }
  0x10   : > { %p357_p10 = scmp.lt.s32.totalorder %s520_s12, 2  ;;  %p591_p11 = por %p91_p7, %p35_p0 }
  0x11   : > { %p595_p12 = por %p97_p8, %p41_p3  ;;  %s600_s23 = sand.u32 1, %s516_s11  }
  0x12   : > { %s738_s21 = scalar_select %p591_p11, 1, 0 }
  0x13   : > { %s739_s22 = scalar_select %p595_p12, 1, 0 }
  0x14   : > { %s333_s24 = sshll.u32 %s520_s12, 6  ;;  %s332_s25 = sshll.u32 %s600_s23, 2 }
  0x15   : > { %s607_s28 = scalar_lea.hbm %s731_s0, %s333_s24  ;;  %s121_s29 = scalar_lea.vmem [#allocation2], %s332_s25 }
  0x16   : > { %s128_s30 = sshll.u32 %s121_s29, 4  ;;  %p611_p13 = pnand %p357_p10, %p580_p5  ;;  %s615_s30 = int_to_ptr.vmem [resolvable:$true] %s128_s30 }
  0x17   : > { %s118_s4 = scalar_lea.sflag [#allocation3], %s600_s23  ;;  %s396_s5 = scalar_lea.hbm %s607_s28, 64 }
  0x18   : > { %p397_p2 = scmp.ne.s32.totalorder %s607_s28, %s396_s5  ;;  %p398_p3 = pneg %p611_p13 }
  0x19   : > { %s401_s8 = scalar_lea.hbm %s731_s0, 128  ;;  %p402_p5 = scmp.lt.s32.totalorder %s607_s28, %s731_s0 }
  0x1a   : > { %p399_p4 = pnand %p398_p3, %p397_p2  ;;  %p403_p8 = scmp.lt.s32.totalorder %s401_s8, %s396_s5 }
  0x1c   : > { %p400_p7 = pneg %p399_p4  ;;  %p404_p10 = por %p403_p8, %p402_p5 }
  0x1e   : > { %p405_p9 = pnand %p404_p10, %p400_p7 }
  0x20   : > { %408 = shalt.err (!%p405_p9)
}
  0x21   : > { %s409_s17 = scalar_lea.vmem %s615_s30, 64  ;;  %s522_s19 = smov [#allocation2]  }
  0x22   : > { %p410_p0 = scmp.ne.s32.totalorder %s615_s30, %s409_s17  ;;  %s414_s24 = sshll.u32 %s522_s19, 4  ;;  %s415_s24 = int_to_ptr.vmem [resolvable:$false] %s414_s24 }
  0x23   : > { %s416_s25 = scalar_lea.vmem %s415_s24, 128  ;;  %p417_p1 = scmp.lt.s32.totalorder %s615_s30, %s415_s24 }
  0x24   : > { %p412_p2 = pnand %p410_p0, %p398_p3  ;;  %p418_p12 = scmp.lt.s32.totalorder %s416_s25, %s409_s17 }
  0x26   : > { %p413_p4 = pneg %p412_p2  ;;  %p419_p11 = por %p418_p12, %p417_p1 }
  0x28   : > { %p420_p5 = pnand %p419_p11, %p413_p4 }
  0x2a   : > { %423 = shalt.err (!%p420_p5)
}
  0x2b   : > { %349 = dma.hbm_to_vmem [thread:$0]  (!%p611_p13), %s607_s28, 64, %s615_s30, %s118_s4  }
  0x2c   : > { %p741_p9 = scmp.lt.s32.totalorder %s520_s12, 3  ;;  %p742_p0 = scmp.ge.s32.totalorder %s520_s12, 1 }
  0x2d   : > { %s334_s27 = sshll.u32 %s520_s12, 4  ;;  %s138_s7 = scalar_lea.vmem [#allocation5], %s600_s23 }
  0x2e   : > { %p648_p7 = pnand %p742_p0, %p741_p9  ;;  %s656_s6 = scalar_lea.hbm %s732_s1, %s334_s27 }
  0x2f   : > { %s145_s8 = sshll.u32 %s138_s7, 4  ;;  %s136_s14 = scalar_lea.sflag [#allocation6], %s600_s23  ;;  %s146_s8 = int_to_ptr.vmem [resolvable:$true] %s145_s8 }
  0x30   : > { %s743_s26 = scalar_select %p648_p7, 1, 0 }
  0x31   : > { %s424_s28 = scalar_lea.hbm %s656_s6, 16  ;;  %s429_s16 = scalar_lea.hbm %s732_s1, 32 }
  0x32   : > { %p425_p11 = scmp.ne.s32.totalorder %s656_s6, %s424_s28  ;;  %p430_p8 = scmp.lt.s32.totalorder %s656_s6, %s732_s1 }
  0x33   : > { %p431_p10 = scmp.lt.s32.totalorder %s429_s16, %s424_s28 }
  0x34   : > { %p427_p12 = pnand %p425_p11, %p398_p3 }
  0x35   : > { %p432_p2 = por %p431_p10, %p430_p8 }
  0x36   : > { %p428_p1 = pneg %p427_p12 }
  0x38   : > { %p433_p4 = pnand %p432_p2, %p428_p1 }
  0x3a   : > { %436 = shalt.err (!%p433_p4)
}
  0x3b   : > { %s437_s24 = scalar_lea.vmem %s146_s8, 16  ;;  %s523_s23 = smov [#allocation5]  }
  0x3c   : > { %p438_p5 = scmp.ne.s32.totalorder %s146_s8, %s437_s24  ;;  %s442_s25 = sshll.u32 %s523_s23, 4  ;;  %s443_s25 = int_to_ptr.vmem [resolvable:$false] %s442_s25 }
  0x3d   : > { %s444_s27 = scalar_lea.vmem %s443_s25, 32  ;;  %p445_p11 = scmp.lt.s32.totalorder %s146_s8, %s443_s25 }
  0x3e   : > { %p440_p9 = pnand %p438_p5, %p398_p3  ;;  %p446_p12 = scmp.lt.s32.totalorder %s444_s27, %s437_s24 }
  0x40   : > { %p441_p0 = pneg %p440_p9  ;;  %p447_p6 = por %p446_p12, %p445_p11 }
  0x42   : > { %p448_p7 = pnand %p447_p6, %p441_p0 }
  0x44   : > { %451 = shalt.err (!%p448_p7)
}
  0x45   : > { %352 = dma.hbm_to_vmem [thread:$0]  (!%p611_p13), %s656_s6, 16, %s146_s8, %s136_s14  }
  0x46   : > { %p744_p1 = scmp.ne.s32.totalorder %s743_s26, 0 }
  0x47   : > { %s681_s29 = sand.u32 (!%p744_p1), 1, %s512_s10   ;;  %p745_p3 = scmp.ne.s32.totalorder (!%p744_p1), %s737_s20, 0 }
  0x48   : > { %154 = sbr.rel (%p744_p1) target bundleno = 377 (0x179), region = 28  ;;  %s336_s5 = sshll.u32 (!%p744_p1), %s681_s29, 2 }
  0x49   : > { %s157_s7 = scalar_lea.sflag (!%p744_p1), [#allocation3], %s681_s29  ;;  %s160_s28 = scalar_lea.vmem (!%p744_p1), [#allocation2], %s336_s5 }
  0x4d   : > { %495 = dma.done.wait (%p745_p3), %s157_s7, 64  }
  0x4e   : > { %497 = vsyncadd (%p745_p3), %s157_s7, 4294967232  ;;  %s166_s3 = scalar_lea.sflag [#allocation6], %s681_s29  ;;  %s168_s26 = scalar_lea.vmem [#allocation5], %s681_s29 }
  0x4f   : > { %499 = dma.done.wait (%p745_p3), %s166_s3, 16  }
  0x50   : > { %501 = vsyncadd (%p745_p3), %s166_s3, 4294967280  ;;  %v195_v0 = vlaneseq  ;;  %vm205_vm0 = vcmask 122880   ;;  %v193_v3 = vld [vmem:[%s168_s26] sm:$0x1]  ;;  %vm201_vm1 = vcmask 125952   ;;  %v524_v9 = vmov 0  }
  0x51   : > { %v192_v4 = vld [vmem:[%s160_s28] sm:$0xf]  ;;  %v206_v5 = vsel %vm205_vm0, %v193_v3, 0.0  ;;  %392 = vset.pattern.permute.xlu1 %v524_v9  ;;  %393 = vset.pattern.permute.xlu0 %v524_v9  ;;  %s337_s20 = sshll.u32 %s562_s13, 4  ;;  %s191_s6 = scalar_lea.vmem [#allocation7], %s681_s29  ;;  %vm228_vm2 = vcmask 24576  }
  0x52   : > { %v196_v1 = vshrl.u32 %v195_v0, 7  ;;  %207 = vadd.xlane.f32.xlu0 %v206_v5  ;;  %v222_v10 = vand.u32 127, %v195_v0  ;;  %s243_s8 = sshll.u32 %s191_s6, 4  ;;  %s241_s4 = scalar_lea.hbm %s733_s2, %s337_s20  ;;  %s244_s8 = int_to_ptr.vmem [resolvable:$true] %s243_s8 }
  0x53   : > { %s231_s16 = scalar_lea.sflag [#allocation4], %s681_s29  ;;  %s452_s17 = scalar_lea.vmem %s244_s8, 16 }
  0x54   : > { %v197_v2 = vsub.s32 0, %v196_v1  ;;  %v225_v11 = vsub.s32 %v222_v10, %v196_v1  ;;  %p453_p6 = scmp.ne.s32.totalorder %s244_s8, %s452_s17  ;;  %p746_p13 = scmp.ne.s32.totalorder %s738_s21, 0 }
  0x55   : > { %s525_s19 = smov [#allocation7]  }
  0x56   : > { %v198_v6 = vrot.slane %v193_v3, %v197_v2  ;;  %p454_p7 = pnand %p453_p6, %p746_p13  ;;  %s456_s24 = sshll.u32 %s525_s19, 4  ;;  %s457_s24 = int_to_ptr.vmem [resolvable:$false] %s456_s24 }
  0x57   : > { %s458_s13 = scalar_lea.vmem %s457_s24, 32  ;;  %p459_p10 = scmp.lt.s32.totalorder %s244_s8, %s457_s24 }
  0x58   : > { %v200_v7 = vmul.f32 %v198_v6, %v192_v4  ;;  %p455_p8 = pneg %p454_p7  ;;  %p460_p2 = scmp.lt.s32.totalorder %s458_s13, %s452_s17 }
  0x5a   : > { %v202_v8 = vsel %vm201_vm1, %v200_v7, 0.0  ;;  %p461_p4 = por %p460_p2, %p459_p10 }
  0x5b   : > { %203 = vadd.xlane.f32.xlu0 %v202_v8 }
  0x5c   : > { %p462_p5 = pnand %p461_p4, %p455_p8 }
  0xdb   : > { %v208_v12 = vpop.xlane.xlu0 %207 }
  0xdc   : > { %v213_v13 = vrot.slane %v208_v12, %v197_v2 }
  0xde   : > { %394 = vrcp.f32 %v213_v13 }
  0xe4   : > { %v204_v14 = vpop.xlane.xlu0 %203 }
  0xeb   : > { %v395_v15 = vpop.eup %394 }
  0xec   : > { %v216_v16 = vmul.f32 %v395_v15, %v204_v14 }
  0xee   : > { %219 = vperm.xlu1 %392, %v216_v16  }
 0x169   : > { %v220_v17 = vpop.permute.xlu1 %219 }
 0x16a   : > { %v226_v18 = vrot.slane %v220_v17, %v225_v11 }
 0x16c   : > { %229 = vst.msk [vmem:[%s191_s6] sm:$0x1] %vm228_vm2, %v226_v18 }
 0x16d   : > { %465 = shalt.err (!%p462_p5)
}
 0x16e   : > { %s466_s23 = scalar_lea.hbm %s241_s4, 16  ;;  %s470_s29 = scalar_lea.hbm %s733_s2, 32 }
 0x16f   : > { %p467_p9 = scmp.ne.s32.totalorder %s241_s4, %s466_s23  ;;  %p471_p12 = scmp.lt.s32.totalorder %s241_s4, %s733_s2 }
 0x170   : > { %p472_p1 = scmp.lt.s32.totalorder %s470_s29, %s466_s23 }
 0x171   : > { %p468_p0 = pnand %p467_p9, %p746_p13 }
 0x172   : > { %p473_p3 = por %p472_p1, %p471_p12 }
 0x173   : > { %p469_p11 = pneg %p468_p0 }
 0x175   : > { %p474_p6 = pnand %p473_p3, %p469_p11 }
 0x177   : > { %477 = shalt.err (!%p474_p6)
}
 0x178   : > { %344 = dma.vmem_to_hbm [thread:$0]  (%p746_p13), %s244_s8, 16, %s241_s4, %s231_s16  }
 0x179 PF: > { %s255_s28 = sand.u32 1, %s508_s9   ;;  %p747_p7 = scmp.ne.s32.totalorder %s739_s22, 0 }
 0x17a   : > { %p748_p8 = scmp.ge.s32.totalorder %s520_s12, 2  ;;  %s256_s3 = scalar_lea.sflag [#allocation4], %s255_s28 }
 0x17c   : > { %p354_p10 = pnand %p748_p8, %p747_p7 }
 0x17e   : > { %p355_p2 = pneg %p354_p10 }
 0x180   : > { %503 = dma.done.wait (%p355_p2), %s256_s3, 16  }
 0x181   : > { %505 = vsyncadd (%p355_p2), %s256_s3, 4294967280  ;;  %p18_p4 = scmp.ge.s32.totalorder %s566_s15, 4   ;;  %s749_s9 = smov %s512_s10 }
 0x182   : > { %s750_s10 = smov %s516_s11  ;;  %s751_s11 = smov %s578_s18 }
 0x183   : > { %s752_s12 = smov %s566_s15  ;;  %20 = sbr.rel (!%p18_p4) target bundleno = 7 (0x7), region = 86 }
 0x188   :  { %260 = vsyncpa [#allocation3], 1 }
 0x189   :  { %262 = vsyncpa [#allocation3 + $0x1], 1 }
 0x18a   :  { %263 = vsyncpa [#allocation6], 1 }
 0x18b   :  { %265 = vsyncpa [#allocation6 + $0x1], 1 }
 0x18c   :  { %266 = vsyncpa [#allocation4], 1 }
 0x18d   :  { %268 = vsyncpa [#allocation4 + $0x1], 1 }

</bundles_post_ra>
